<compile_context>
chip_gen: v7x
topology: tpu7x:2x2x1
jax: 0.10.0
libtpu: 0.0.40
codegen_flags: <defaults>
</compile_context>

<pallas_src>
import functools

import jax
import jax.numpy as jnp
from jax.experimental import pallas as pl
from jax.experimental.pallas import tpu as pltpu


# --------------------------------------------------------------------------- #
# Element-wise focal loss math (numerically stable, single exp)
# --------------------------------------------------------------------------- #
def _modulator(one_m_pt, gamma):
    """(1 - p_t) ** gamma, specialised for small integer gammas (pure VPU)."""
    g = float(gamma)
    if g == 0.0:
        return None
    if g == int(g) and 1 <= int(g) <= 4:
        gi = int(g)
        if gi == 1:
            return one_m_pt
        sq = one_m_pt * one_m_pt
        if gi == 2:
            return sq
        if gi == 3:
            return sq * one_m_pt
        return sq * sq
    return one_m_pt ** g


def _focal_loss_elems(x, t, alpha, gamma, *, inside_kernel):
    """Per-element focal loss.  x, t are float32 arrays of equal shape."""
    e = jnp.exp(-jnp.abs(x))                    # in (0, 1]; one EUP exp
    # BCE-with-logits, stable: max(x,0) - x*t + log1p(exp(-|x|))
    ce = jnp.maximum(x, 0.0) - x * t + jnp.log1p(e)
    if inside_kernel:
        inv_1pe = pl.reciprocal(1.0 + e, approx=False)   # EUP, not VALU divide
    else:
        inv_1pe = 1.0 / (1.0 + e)
    p = jnp.where(x >= 0.0, inv_1pe, e * inv_1pe)        # sigmoid(x), no NaNs
    # 1 - p_t == p + t - 2*p*t  (exact algebraic simplification)
    one_m_pt = p + t - 2.0 * (p * t)
    mod = _modulator(one_m_pt, gamma)
    loss = ce if mod is None else ce * mod
    if float(alpha) >= 0.0:
        # alpha_t == (1-alpha) + (2*alpha-1)*t  (2 ops instead of 4)
        loss = loss * ((1.0 - alpha) + (2.0 * alpha - 1.0) * t)
    return loss


# --------------------------------------------------------------------------- #
# Kernel
# --------------------------------------------------------------------------- #
def _focal_kernel(x_ref, t_ref, out_ref, acc_ref, *, alpha, gamma, inner,
                  block_rows, rows, nb_full, need_mask):
    i = pl.program_id(0)          # partial-sum (core) axis
    j = pl.program_id(1)          # reduction axis over row blocks

    @pl.when(j == 0)
    def _init():
        acc_ref[...] = jnp.zeros_like(acc_ref)

    def _block_loss():
        x = x_ref[...].astype(jnp.float32)
        t = t_ref[...].astype(jnp.float32)
        return _focal_loss_elems(x, t, alpha, gamma, inside_kernel=True)

    if not need_mask:
        # Hot path: no mask code at all.
        acc_ref[...] += jnp.sum(_block_loss(), axis=0, keepdims=True)
    else:
        rb = i * inner + j        # logical row-block index

        @pl.when(rb < nb_full)
        def _fast():              # block entirely in-bounds: no mask
            acc_ref[...] += jnp.sum(_block_loss(), axis=0, keepdims=True)

        @pl.when(rb >= nb_full)
        def _boundary():          # partial last block or clamp duplicate
            loss = _block_loss()
            row = jax.lax.broadcasted_iota(jnp.int32, loss.shape, 0)
            valid = (rb * block_rows + row) < rows    # row index: no overflow
            acc_ref[...] += jnp.sum(jnp.where(valid, loss, 0.0),
                                    axis=0, keepdims=True)

    @pl.when(j == pl.num_programs(1) - 1)
    def _finalize():
        val = jnp.sum(acc_ref[...], axis=-1, keepdims=True)  # one x-lane reduce
        out_ref[...] = jnp.broadcast_to(val, out_ref.shape)


# --------------------------------------------------------------------------- #
# Wrapper
# --------------------------------------------------------------------------- #
def _sublane_multiple(dtype):
    return {4: 8, 2: 16, 1: 32}.get(jnp.dtype(dtype).itemsize, 8)


def _default_num_partials():
    """2 on multi-TensorCore chips (v7x) when detectable, else 1."""
    try:
        info = pltpu.get_tpu_info()
    except Exception:
        return 1
    for attr in ("num_cores", "core_count", "tensorcore_count",
                 "num_tensorcores"):
        v = getattr(info, attr, None)
        if isinstance(v, int) and v > 0:
            return min(v, 2)
    return 1


def focal_loss(classifications, targets, alpha=0.25, gamma=2.0, reduce="mean",
               num_partials=None, block_elems=1 << 20, core_parallel=False):
    """Pallas TPU implementation of FocalLoss.forward (reduce in {'mean','sum'}).

    num_partials : partial sums along the leading "parallel" grid axis
                   (defaults to the TensorCore count when detectable).
    block_elems  : target elements per input block (default 1M -> 4 MiB f32).
    core_parallel: use pltpu.CORE_PARALLEL for the partial axis (v7x only).
    """
    assert classifications.shape == targets.shape
    x = classifications.reshape(-1)
    t = targets.reshape(-1)
    n = x.shape[0]
    assert n > 0

    if reduce == "mean":
        inv_count = 1.0 / float(n)
    elif reduce == "sum":
        inv_count = 1.0
    else:
        raise ValueError("reduce type is wrong!")

    if num_partials is None:
        num_partials = _default_num_partials()

    # Lane width: prefer an exact divisor (free reshape, no tail).
    lanes = None
    for cand in (1024, 512, 256, 128):
        if n >= cand and n % cand == 0:
            lanes = cand
            break
    if lanes is None:
        lanes = 1024 if n >= 8192 else 128

    rows = n // lanes
    n_main = rows * lanes
    tail = n - n_main

    # Tiny inputs (< one lane row): plain JAX, no kernel launch.
    if rows == 0:
        total = jnp.sum(_focal_loss_elems(x.astype(jnp.float32),
                                          t.astype(jnp.float32),
                                          alpha, gamma, inside_kernel=False))
        return total * inv_count

    # Ragged tail (< lanes elements): fold in with plain JAX instead of padding
    # (avoids a full-array copy + in-kernel element masking).
    if tail:
        x_main = jax.lax.slice(x, (0,), (n_main,))
        t_main = jax.lax.slice(t, (0,), (n_main,))
        tail_sum = jnp.sum(_focal_loss_elems(
            jax.lax.slice(x, (n_main,), (n,)).astype(jnp.float32),
            jax.lax.slice(t, (n_main,), (n,)).astype(jnp.float32),
            alpha, gamma, inside_kernel=False))
    else:
        x_main, t_main = x, t
        tail_sum = None

    x2 = x_main.reshape(rows, lanes)      # free: contiguous reshape
    t2 = t_main.reshape(rows, lanes)

    # Row-block size: full rows, or a multiple of the packed sublane multiple.
    sub = max(_sublane_multiple(x2.dtype), _sublane_multiple(t2.dtype))
    block_rows = max(sub, block_elems // lanes)
    if block_rows >= rows:
        block_rows = rows
    else:
        block_rows = (block_rows // sub) * sub

    nb = pl.cdiv(rows, block_rows)                  # real row-block count
    num_partials = max(1, min(num_partials, nb))
    inner = pl.cdiv(nb, num_partials)               # reduction steps / partial
    nb_full = rows // block_rows                    # fully-valid blocks
    covered_rows = num_partials * inner * block_rows
    need_mask = covered_rows != rows                # boundary or clamp dupes

    if num_partials * inner == nb:
        in_map = lambda i, j: (i * inner + j, 0)
    else:                                           # clamp keeps DMAs in-bounds;
        nb_max = nb - 1                             # dupes are zeroed in-kernel
        in_map = lambda i, j: (jnp.minimum(i * inner + j, nb_max), 0)

    kernel = functools.partial(
        _focal_kernel, alpha=float(alpha), gamma=float(gamma), inner=inner,
        block_rows=block_rows, rows=rows, nb_full=nb_full, need_mask=need_mask)

    # VMEM budget: 2 inputs x 2 buffers x block (+ acc/out), with headroom.
    block_bytes = block_rows * lanes * (x2.dtype.itemsize + t2.dtype.itemsize)
    vmem_limit = min(max(32 << 20, 2 * block_bytes + (8 << 20)), 128 << 20)

    out_bytes = num_partials * 8 * 128 * 4
    cost = pl.CostEstimate(
        flops=20 * n_main,
        transcendentals=3 * n_main,
        bytes_accessed=int(x2.size * x2.dtype.itemsize
                           + t2.size * t2.dtype.itemsize + out_bytes))

    part_sem = pltpu.CORE_PARALLEL if core_parallel else "parallel"

    out = pl.pallas_call(
        kernel,
        out_shape=jax.ShapeDtypeStruct((num_partials, 8, 128), jnp.float32),
        grid_spec=pltpu.PrefetchScalarGridSpec(
            num_scalar_prefetch=0,
            grid=(num_partials, inner),
            in_specs=[
                pl.BlockSpec((block_rows, lanes), in_map),
                pl.BlockSpec((block_rows, lanes), in_map),
            ],
            out_specs=pl.BlockSpec((1, 8, 128), lambda i, j: (i, 0, 0)),
            scratch_shapes=[pltpu.VMEM((1, lanes), jnp.float32)],
        ),
        compiler_params=pltpu.CompilerParams(
            dimension_semantics=(part_sem, "arbitrary"),
            vmem_limit_bytes=vmem_limit),
        cost_estimate=cost,
    )(x2, t2)

    partials = out[:, 0, 0]
    total = partials[0] if num_partials == 1 else jnp.sum(partials)
    if tail_sum is not None:
        total = total + tail_sum
    return total * inv_count if inv_count != 1.0 else total


# --------------------------------------------------------------------------- #
# Pure-JAX reference (mirror of the PyTorch FocalLoss.forward)
# --------------------------------------------------------------------------- #
def _reference(x, t, alpha=0.25, gamma=2.0, reduce="mean"):
    x = x.astype(jnp.float32)
    t = t.astype(jnp.float32)
    ce = jnp.maximum(x, 0.0) - x * t + jnp.log1p(jnp.exp(-jnp.abs(x)))
    p = jax.nn.sigmoid(x)
    p_t = p * t + (1.0 - p) * (1.0 - t)
    loss = ce * (1.0 - p_t) ** gamma
    if alpha >= 0:
        loss = (alpha * t + (1.0 - alpha) * (1.0 - t)) * loss
    return loss.sum() if reduce == "sum" else loss.mean()


if __name__ == "__main__":
    key = jax.random.PRNGKey(0)
    k1, k2, k3, k4 = jax.random.split(key, 4)

    # Case 1: link-prediction-style batch (16 x 256 logits), single-block fast
    # path, saturated logits for numerical stability.
    logits = jax.random.normal(k1, (16, 256), dtype=jnp.float32) * 4.0
    logits = logits.at[0, 0].set(40.0).at[1, 1].set(-40.0)
    labels = (jax.random.uniform(k2, (16, 256)) > 0.5).astype(jnp.float32)
    out1 = jax.block_until_ready(focal_loss(logits, labels))
    ref1 = _reference(logits, labels)
    assert bool(jnp.isfinite(out1)), out1
    assert jnp.allclose(out1, ref1, rtol=1e-4, atol=1e-6), (out1, ref1)

    # Case 1b: non-default (integer) gamma specialisation.
    out1b = jax.block_until_ready(focal_loss(logits, labels, gamma=1.0))
    ref1b = _reference(logits, labels, gamma=1.0)
    assert jnp.allclose(out1b, ref1b, rtol=1e-4, atol=1e-6), (out1b, ref1b)

    # Case 2: ragged shape -> lane-aligned prefix in kernel + JAX tail, no pad.
    x2 = jax.random.normal(k3, (5, 37), dtype=jnp.float32)
    t2 = (jax.random.uniform(k4, (5, 37)) > 0.5).astype(jnp.float32)
    out2 = jax.block_until_ready(focal_loss(x2, t2, reduce="sum"))
    ref2 = _reference(x2, t2, reduce="sum")
    assert jnp.allclose(out2, ref2, rtol=1e-4, atol=1e-5), (out2, ref2)

    # Case 3: small block size -> multi-step accumulator, exact tiling (no mask).
    x3 = jax.random.normal(k1, (64, 256), dtype=jnp.float32)
    t3 = (jax.random.uniform(k2, (64, 256)) > 0.5).astype(jnp.float32)
    out3 = jax.block_until_ready(focal_loss(x3, t3, block_elems=8 * 1024))
    ref3 = _reference(x3, t3)
    assert jnp.allclose(out3, ref3, rtol=1e-4, atol=1e-6), (out3, ref3)

    # Case 4: rows not a multiple of block_rows -> pl.when boundary-mask branch.
    x4 = jax.random.normal(k3, (72, 256), dtype=jnp.float32)
    t4 = (jax.random.uniform(k4, (72, 256)) > 0.5).astype(jnp.float32)
    out4 = jax.block_until_ready(focal_loss(x4, t4, block_elems=8 * 1024))
    ref4 = _reference(x4, t4)
    assert jnp.allclose(out4, ref4, rtol=1e-4, atol=1e-6), (out4, ref4)

    # Case 5: two partial sums (clamp-duplicate blocks must contribute zero).
    out5 = jax.block_until_ready(
        focal_loss(x4, t4, block_elems=8 * 1024, num_partials=2))
    assert jnp.allclose(out5, ref4, rtol=1e-4, atol=1e-6), (out5, ref4)

    # Case 6: bf16 inputs stream at native width (kernel upcasts per block).
    x6 = (jax.random.normal(k1, (16, 256), dtype=jnp.float32) * 4.0
          ).astype(jnp.bfloat16)
    t6 = (jax.random.uniform(k2, (16, 256)) > 0.5).astype(jnp.bfloat16)
    out6 = jax.block_until_ready(focal_loss(x6, t6))
    ref6 = _reference(x6.astype(jnp.float32), t6.astype(jnp.float32))
    assert jnp.allclose(out6, ref6, rtol=1e-4, atol=1e-6), (out6, ref6)

    print("KERNEL_OK")
</pallas_src>

<mosaic_0001>
module attributes {stable_mosaic.version = 11 : i64} {
  func.func @_focal_kernel(%arg0: i32, %arg1: i32, %arg2: memref<4x1024xf32, #tpu.memory_space<vmem>>, %arg3: memref<4x1024xf32, #tpu.memory_space<vmem>>, %arg4: memref<1x8x128xf32, #tpu.memory_space<vmem>>, %arg5: memref<1x1024xf32, #tpu.memory_space<vmem>>) attributes {dimension_semantics = [#tpu.dimension_semantics<parallel>, #tpu.dimension_semantics<arbitrary>], iteration_bounds = array<i64: 1, 1>, scalar_prefetch = 0 : i64, scratch_operands = 1 : i64, tpu.core_type = #tpu.core_type<tc>, window_params = [{transform_indices = @transform_0, window_bounds = array<i64: 4, 1024>}, {transform_indices = @transform_1, window_bounds = array<i64: 4, 1024>}, {transform_indices = @transform_2, window_bounds = array<i64: 1, 8, 128>}]} {
    %c0_i32 = arith.constant 0 : i32
    %0 = arith.cmpi eq, %arg1, %c0_i32 : i32
    %1 = arith.extui %0 : i1 to i32
    %c0_i32_0 = arith.constant 0 : i32
    %2 = arith.cmpi ne, %1, %c0_i32_0 : i32
    scf.if %2 {
      %cst_17 = arith.constant 0.000000e+00 : f32
      %42 = vector.broadcast %cst_17 : f32 to vector<1x1024xf32>
      %c0_18 = arith.constant 0 : index
      %c0_19 = arith.constant 0 : index
      %43 = vector.load %arg5[%c0_18, %c0_19] : memref<1x1024xf32, #tpu.memory_space<vmem>>, vector<1x1024xf32>
      tpu.vector_store %arg5[%c0_18, %c0_19], %42 {strides = array<i32>} : memref<1x1024xf32, #tpu.memory_space<vmem>>, vector<1x1024xf32>,
    } else {
    }
    %c0 = arith.constant 0 : index
    %c0_1 = arith.constant 0 : index
    %3 = vector.load %arg5[%c0, %c0_1] : memref<1x1024xf32, #tpu.memory_space<vmem>>, vector<1x1024xf32>
    %c0_2 = arith.constant 0 : index
    %c0_3 = arith.constant 0 : index
    %4 = vector.load %arg2[%c0_2, %c0_3] : memref<4x1024xf32, #tpu.memory_space<vmem>>, vector<4x1024xf32>
    %c0_4 = arith.constant 0 : index
    %c0_5 = arith.constant 0 : index
    %5 = vector.load %arg3[%c0_4, %c0_5] : memref<4x1024xf32, #tpu.memory_space<vmem>>, vector<4x1024xf32>
    %6 = math.absf %4 : vector<4x1024xf32>
    %cst = arith.constant 0.000000e+00 : f32
    %7 = vector.broadcast %cst : f32 to vector<4x1024xf32>
    %8 = arith.subf %7, %6 : vector<4x1024xf32>
    %9 = math.exp %8 : vector<4x1024xf32>
    %cst_6 = arith.constant 0.000000e+00 : f32
    %10 = vector.broadcast %cst_6 : f32 to vector<4x1024xf32>
    %11 = arith.maximumf %4, %10 : vector<4x1024xf32>
    %12 = arith.mulf %4, %5 : vector<4x1024xf32>
    %13 = arith.subf %11, %12 : vector<4x1024xf32>
    %14 = math.log1p %9 : vector<4x1024xf32>
    %15 = arith.addf %13, %14 : vector<4x1024xf32>
    %cst_7 = arith.constant 1.000000e+00 : f32
    %16 = vector.broadcast %cst_7 : f32 to vector<4x1024xf32>
    %17 = arith.addf %16, %9 : vector<4x1024xf32>
    %18 = tpu.reciprocal %17 : vector<4x1024xf32> -> vector<4x1024xf32>
    %cst_8 = arith.constant 0.000000e+00 : f32
    %19 = vector.broadcast %cst_8 : f32 to vector<4x1024xf32>
    %20 = arith.cmpf oge, %4, %19 : vector<4x1024xf32>
    %21 = arith.mulf %9, %18 : vector<4x1024xf32>
    %22 = arith.select %20, %18, %21 : vector<4x1024xi1>, vector<4x1024xf32>
    %23 = arith.addf %22, %5 : vector<4x1024xf32>
    %24 = arith.mulf %22, %5 : vector<4x1024xf32>
    %cst_9 = arith.constant 2.000000e+00 : f32
    %25 = vector.broadcast %cst_9 : f32 to vector<4x1024xf32>
    %26 = arith.mulf %25, %24 : vector<4x1024xf32>
    %27 = arith.subf %23, %26 : vector<4x1024xf32>
    %28 = arith.mulf %27, %27 : vector<4x1024xf32>
    %29 = arith.mulf %15, %28 : vector<4x1024xf32>
    %cst_10 = arith.constant -5.000000e-01 : f32
    %30 = vector.broadcast %cst_10 : f32 to vector<4x1024xf32>
    %31 = arith.mulf %30, %5 : vector<4x1024xf32>
    %cst_11 = arith.constant 7.500000e-01 : f32
    %32 = vector.broadcast %cst_11 : f32 to vector<4x1024xf32>
    %33 = arith.addf %32, %31 : vector<4x1024xf32>
    %34 = arith.mulf %29, %33 : vector<4x1024xf32>
    %cst_12 = arith.constant dense<0.000000e+00> : vector<1024xf32>
    %35 = vector.multi_reduction <add>, %34, %cst_12 [0] : vector<4x1024xf32> to vector<1024xf32>
    %36 = vector.shape_cast %35 : vector<1024xf32> to vector<1x1024xf32>
    %37 = arith.addf %3, %36 : vector<1x1024xf32>
    %c0_13 = arith.constant 0 : index
    %c0_14 = arith.constant 0 : index
    %38 = vector.load %arg5[%c0_13, %c0_14] : memref<1x1024xf32, #tpu.memory_space<vmem>>, vector<1x1024xf32>
    tpu.vector_store %arg5[%c0_13, %c0_14], %37 {strides = array<i32>} : memref<1x1024xf32, #tpu.memory_space<vmem>>, vector<1x1024xf32>,
    %c0_i32_15 = arith.constant 0 : i32
    %39 = arith.cmpi eq, %arg1, %c0_i32_15 : i32
    %40 = arith.extui %39 : i1 to i32
    %c0_i32_16 = arith.constant 0 : i32
    %41 = arith.cmpi ne, %40, %c0_i32_16 : i32
    scf.if %41 {
      %c0_17 = arith.constant 0 : index
      %c0_18 = arith.constant 0 : index
      %42 = vector.load %arg5[%c0_17, %c0_18] : memref<1x1024xf32, #tpu.memory_space<vmem>>, vector<1x1024xf32>
      %cst_19 = arith.constant dense<0.000000e+00> : vector<1xf32>
      %43 = vector.multi_reduction <add>, %42, %cst_19 [1] : vector<1x1024xf32> to vector<1xf32>
      %44 = vector.shape_cast %43 : vector<1xf32> to vector<1x1xf32>
      %45 = vector.shape_cast %44 : vector<1x1xf32> to vector<1x1x1xf32>
      %46 = vector.broadcast %45 : vector<1x1x1xf32> to vector<1x8x128xf32>
      %c0_20 = arith.constant 0 : index
      %c0_21 = arith.constant 0 : index
      %c0_22 = arith.constant 0 : index
      %47 = vector.load %arg4[%c0_20, %c0_21, %c0_22] : memref<1x8x128xf32, #tpu.memory_space<vmem>>, vector<1x8x128xf32>
      tpu.vector_store %arg4[%c0_20, %c0_21, %c0_22], %46 {strides = array<i32>} : memref<1x8x128xf32, #tpu.memory_space<vmem>>, vector<1x8x128xf32>,
    } else {
    }
    return
  }
  func.func @transform_0(%arg0: i32, %arg1: i32) -> (i32, i32) {
    %c1_i32 = arith.constant 1 : i32
    %0 = arith.muli %arg0, %c1_i32 : i32
    %1 = arith.addi %0, %arg1 : i32
    %c0_i32 = arith.constant 0 : i32
    %c0_i32_0 = arith.constant 0 : i32
    return %1, %c0_i32 : i32, i32
  }
  func.func @transform_1(%arg0: i32, %arg1: i32) -> (i32, i32) {
    %c1_i32 = arith.constant 1 : i32
    %0 = arith.muli %arg0, %c1_i32 : i32
    %1 = arith.addi %0, %arg1 : i32
    %c0_i32 = arith.constant 0 : i32
    %c0_i32_0 = arith.constant 0 : i32
    return %1, %c0_i32 : i32, i32
  }
  func.func @transform_2(%arg0: i32, %arg1: i32) -> (i32, i32, i32) {
    %c0_i32 = arith.constant 0 : i32
    %c0_i32_0 = arith.constant 0 : i32
    %c0_i32_1 = arith.constant 0 : i32
    return %arg0, %c0_i32, %c0_i32_0 : i32, i32, i32
  }
}

</mosaic_0001>

<bundles_post_ra>
// kernel: tpu_custom_call.1
= control target key start
LH: loop header
LB: loop body
LE: loop exit
PB: predicated region body
PF: predicated region fallthrough
CT: control target
= control target key end

     0   :  { %7 = vsyncpa [#allocation4], 0  ;;  %s697_s0 = inlined_call_operand.hbm [shape: f32[4,1024], index: 0, kind: input, shape index: {}]   ;;  %s698_s1 = inlined_call_operand.hbm [shape: f32[4,1024], index: 1, kind: input, shape index: {}]   ;;  %s699_s2 = inlined_call_operand.hbm [shape: f32[1,8,128], index: 2, kind: output, shape index: {}]  }
   0x1   :  { %8 = vsyncpa [#allocation7], 0 }
   0x2   :  { %9 = vsyncpa [#allocation5], 0  ;;  %s497_s9 = smov [#allocation3]   ;;  %s498_s11 = smov [#allocation6]  }
   0x3   :  { %s20_s10 = sshll.u32 %s497_s9, 4  ;;  %s34_s12 = sshll.u32 %s498_s11, 4  ;;  %s21_s10 = int_to_ptr.vmem [resolvable:$true] %s20_s10  ;;  %s35_s12 = int_to_ptr.vmem [resolvable:$true] %s34_s12 }
   0x4   :  { %s425_s15 = scalar_lea.hbm %s697_s0, 512 }
   0x5   :  { %p426_p0 = scmp.ne.s32.totalorder %s697_s0, %s425_s15  ;;  %p429_p1 = scmp.lt.u32.totalorder %s425_s15, %s697_s0 }
   0x7   :  { %p431_p2 = pnand %p429_p1, %p426_p0 }
   0x9   :  { %434 = shalt.err (!%p431_p2)
}
   0xa   :  { %s435_s20 = scalar_lea.vmem %s21_s10, 512  ;;  %p440_p4 = scmp.lt.s32.totalorder %s21_s10, %s21_s10 }
   0xb   :  { %p436_p3 = scmp.ne.s32.totalorder %s21_s10, %s435_s20  ;;  %p441_p5 = scmp.lt.s32.totalorder %s435_s20, %s435_s20 }
   0xd   :  { %p442_p6 = por %p441_p5, %p440_p4 }
   0xf   :  { %p443_p7 = pnand %p442_p6, %p436_p3 }
  0x11   :  { %446 = shalt.err (!%p443_p7)
}
  0x12   :  { %23 = dma.hbm_to_vmem [thread:$0]  %s697_s0, 512, %s21_s10, [#allocation4]  }
  0x13   :  { %s447_s25 = scalar_lea.hbm %s698_s1, 512 }
  0x14   :  { %p448_p8 = scmp.ne.s32.totalorder %s698_s1, %s447_s25  ;;  %p451_p9 = scmp.lt.u32.totalorder %s447_s25, %s698_s1 }
  0x16   :  { %p453_p10 = pnand %p451_p9, %p448_p8 }
  0x18   :  { %456 = shalt.err (!%p453_p10)
}
  0x19   :  { %s457_s30 = scalar_lea.vmem %s35_s12, 512  ;;  %p462_p12 = scmp.lt.s32.totalorder %s35_s12, %s35_s12 }
  0x1a   :  { %p458_p11 = scmp.ne.s32.totalorder %s35_s12, %s457_s30  ;;  %p463_p13 = scmp.lt.s32.totalorder %s457_s30, %s457_s30 }
  0x1c   :  { %p464_p0 = por %p463_p13, %p462_p12 }
  0x1e   :  { %p465_p1 = pnand %p464_p0, %p458_p11 }
  0x20   :  { %468 = shalt.err (!%p465_p1)
}
  0x21   :  { %37 = dma.hbm_to_vmem [thread:$0]  %s698_s1, 512, %s35_s12, [#allocation7]  }
  0x22   :  { %491 = dma.done.wait [#allocation4], 512  }
  0x23   :  { %492 = vsyncadd [#allocation4], 4294966784 }
  0x24   :  { %493 = dma.done.wait [#allocation7], 512  }
  0x25   :  { %494 = vsyncadd [#allocation7], 4294966784  ;;  %v540_v0 = vld [vmem:[#allocation3] sm:$0xff]  ;;  %v542_v1 = vld [vmem:[#allocation3 + $0x8] sm:$0xff]  ;;  %v268_v45 = vlaneseq  ;;  %vm196_vm8 = vcmask 1043456   ;;  %vm358_vm9 = vcmask 1040384  }
  0x26   :  { %v544_v2 = vld [vmem:[#allocation3 + $0x10] sm:$0xff]  ;;  %v546_v3 = vld [vmem:[#allocation3 + $0x18] sm:$0xff]  ;;  %v60_v4 = vand.u32 2147483647, %v540_v0  ;;  %v61_v5 = vand.u32 2147483647, %v542_v1 }
  0x27   :  { %v62_v6 = vand.u32 2147483647, %v544_v2  ;;  %v63_v7 = vand.u32 2147483647, %v546_v3  ;;  %v564_v24 = vld [vmem:[#allocation6] sm:$0xff]  ;;  %v566_v25 = vld [vmem:[#allocation6 + $0x8] sm:$0xff] }
  0x28   :  { %v64_v8 = vsub.f32 0.0, %v60_v4  ;;  %v65_v9 = vsub.f32 0.0, %v61_v5  ;;  %v76_v26 = vmax.f32 %v540_v0, 0.0  ;;  %v80_v27 = vmul.f32 %v564_v24, %v540_v0  ;;  %v574_v30 = vld [vmem:[#allocation6 + $0x10] sm:$0xff]  ;;  %v576_v31 = vld [vmem:[#allocation6 + $0x18] sm:$0xff]  ;;  %s500_s1 = smov [#allocation8]  }
  0x29   :  { %v66_v10 = vsub.f32 0.0, %v62_v6  ;;  %v67_v11 = vsub.f32 0.0, %v63_v7  ;;  %v81_v28 = vmul.f32 %v566_v25, %v542_v1  ;;  %v77_v32 = vmax.f32 %v542_v1, 0.0  ;;  %s387_s4 = sshll.u32 %s500_s1, 4  ;;  %s388_s4 = int_to_ptr.vmem [resolvable:$true] %s387_s4 }
  0x2a   :  { %v68_v12 = vmul.f32 1.442695, %v64_v8  ;;  %v70_v13 = vmul.f32 1.442695, %v65_v9  ;;  %v78_v33 = vmax.f32 %v544_v2, 0.0  ;;  %v79_v34 = vmax.f32 %v546_v3, 0.0  ;;  %p474_p3 = scmp.lt.s32.totalorder %s388_s4, %s388_s4 }
  0x2b   :  { %v72_v14 = vmul.f32 1.442695, %v66_v10  ;;  %v74_v15 = vmul.f32 1.442695, %v67_v11  ;;  %v82_v35 = vmul.f32 %v574_v30, %v544_v2  ;;  %v83_v36 = vmul.f32 %v576_v31, %v546_v3  ;;  %s469_s5 = scalar_lea.vmem %s388_s4, 128 }
  0x2c   :  { %401 = vpow2.f32 %v68_v12  ;;  %v84_v42 = vsub.f32 %v76_v26, %v80_v27  ;;  %v85_v43 = vsub.f32 %v77_v32, %v81_v28  ;;  %vm136_vm0 = vcmp.ge.f32.partialorder %v540_v0, 0.0  ;;  %p470_p2 = scmp.ne.s32.totalorder %s388_s4, %s469_s5  ;;  %p475_p4 = scmp.lt.s32.totalorder %s469_s5, %s469_s5 }
  0x2d   :  { %403 = vpow2.f32 %v70_v13  ;;  %v589_v46 = vsub.f32 %v78_v33, %v82_v35  ;;  %v591_v47 = vsub.f32 %v79_v34, %v83_v36  ;;  %vm137_vm1 = vcmp.ge.f32.partialorder %v542_v1, 0.0 }
  0x2e   :  { %405 = vpow2.f32 %v72_v14  ;;  %vm138_vm3 = vcmp.ge.f32.partialorder %v544_v2, 0.0  ;;  %vm139_vm4 = vcmp.ge.f32.partialorder %v546_v3, 0.0  ;;  %v172_v60 = vmul.f32 -0.5, %v564_v24  ;;  %p476_p5 = por %p475_p4, %p474_p3 }
  0x2f   :  { %407 = vpow2.f32 %v74_v15  ;;  %v173_v4 = vmul.f32 -0.5, %v566_v25  ;;  %v174_v5 = vmul.f32 -0.5, %v574_v30 }
  0x30   :  { %p477_p6 = pnand %p476_p5, %p470_p2 }
  0x36   :  { %v552_v16 = vpop.eup %401 }
  0x37   :  { %v554_v17 = vpop.eup %403  ;;  %v88_v18 = vadd.f32 1.0, %v552_v16  ;;  %v91_v29 = vmul.f32 -0.5, %v552_v16  ;;  %v94_v44 = vand.u32 2147483647, %v552_v16 }
  0x38   :  { %v557_v19 = vpop.eup %405  ;;  %v97_v21 = vadd.f32 1.0, %v554_v17  ;;  %v100_v37 = vmul.f32 -0.5, %v554_v17  ;;  %v103_v49 = vand.u32 2147483647, %v554_v17 }
  0x39   :  { %v559_v20 = vpop.eup %407  ;;  %409 = vlog2.f32 %v88_v18  ;;  %v106_v22 = vadd.f32 1.0, %v557_v19  ;;  %v109_v38 = vmul.f32 -0.5, %v557_v19  ;;  %v92_v39 = vadd.f32 1.0, %v91_v29 }
  0x3a   :  { %411 = vlog2.f32 %v97_v21  ;;  %v115_v23 = vadd.f32 1.0, %v559_v20  ;;  %v118_v40 = vmul.f32 -0.5, %v559_v20  ;;  %v101_v48 = vadd.f32 1.0, %v100_v37 }
  0x3b   :  { %413 = vlog2.f32 %v106_v22  ;;  %v110_v51 = vadd.f32 1.0, %v109_v38  ;;  %v112_v52 = vand.u32 2147483647, %v557_v19  ;;  %v93_v55 = vmul.f32 %v552_v16, %v92_v39 }
  0x3c   :  { %415 = vlog2.f32 %v115_v23  ;;  %v119_v56 = vadd.f32 1.0, %v118_v40  ;;  %v121_v57 = vand.u32 2147483647, %v559_v20  ;;  %vm599_vm2 = vcmp.lt.f32.partialorder %v94_v44, 0.0004427343 }
  0x3d   :  { %417 = vrcp.f32 %v88_v18  ;;  %v102_v62 = vmul.f32 %v554_v17, %v101_v48  ;;  %vm607_vm5 = vcmp.lt.f32.partialorder %v103_v49, 0.0004427343  ;;  %v111_v8 = vmul.f32 %v557_v19, %v110_v51 }
  0x3e   :  { %419 = vrcp.f32 %v97_v21  ;;  %vm614_vm6 = vcmp.lt.f32.partialorder %v112_v52, 0.0004427343  ;;  %v120_v13 = vmul.f32 %v559_v20, %v119_v56  ;;  %vm622_vm7 = vcmp.lt.f32.partialorder %v121_v57, 0.0004427343 }
  0x3f   :  { %421 = vrcp.f32 %v106_v22  ;;  %v499_v57 = vmov 1966171168  }
  0x40   :  { %423 = vrcp.f32 %v115_v23 }
  0x43   :  { %v410_v41 = vpop.eup %409 }
  0x44   :  { %v412_v50 = vpop.eup %411  ;;  %v90_v54 = vmul.f32 0.6931472, %v410_v41 }
  0x45   :  { %v414_v53 = vpop.eup %413  ;;  %v99_v7 = vmul.f32 0.6931472, %v412_v50  ;;  %v176_v50 = vadd.f32 0.75, %v172_v60  ;;  %v657_v60 = vshrl.u32 %v268_v45, 7 }
  0x46   :  { %v416_v58 = vpop.eup %415  ;;  %v96_v12 = vsel %vm599_vm2, %v93_v55, %v90_v54  ;;  %v108_v21 = vmul.f32 0.6931472, %v414_v53  ;;  %v177_v54 = vadd.f32 0.75, %v173_v4 }
  0x47   :  { %v418_v61 = vpop.eup %417  ;;  %v117_v22 = vmul.f32 0.6931472, %v416_v58  ;;  %v654_v58 = vunpack.c.l.s4 %v499_v57 }
  0x48   :  { %v420_v6 = vpop.eup %419  ;;  %v140_v10 = vmul.f32 %v418_v61, %v552_v16 }
  0x49   :  { %v422_v11 = vpop.eup %421  ;;  %v141_v15 = vmul.f32 %v420_v6, %v554_v17  ;;  %v105_v17 = vsel %vm607_vm5, %v102_v62, %v99_v7  ;;  %v123_v37 = vsel %vm622_vm7, %v120_v13, %v117_v22 }
  0x4a   :  { %v424_v18 = vpop.eup %423  ;;  %v142_v23 = vmul.f32 %v422_v11, %v557_v19  ;;  %v144_v16 = vsel %vm136_vm0, %v418_v61, %v140_v10  ;;  %v125_v39 = vadd.f32 %v105_v17, %v85_v43  ;;  %v127_v51 = vadd.f32 %v123_v37, %v591_v47 }
  0x4b   :  { %v143_v26 = vmul.f32 %v424_v18, %v559_v20  ;;  %v145_v27 = vsel %vm137_vm1, %v420_v6, %v141_v15  ;;  %v148_v28 = vadd.f32 %v144_v16, %v564_v24  ;;  %v152_v29 = vmul.f32 %v144_v16, %v564_v24 }
  0x4c   :  { %v146_v32 = vsel %vm138_vm3, %v422_v11, %v142_v23  ;;  %v149_v19 = vadd.f32 %v145_v27, %v566_v25  ;;  %v153_v0 = vmul.f32 %v145_v27, %v566_v25  ;;  %v114_v24 = vsel %vm614_vm6, %v111_v8, %v108_v21 }
  0x4d   :  { %v147_v20 = vsel %vm139_vm4, %v424_v18, %v143_v26  ;;  %v150_v1 = vadd.f32 %v146_v32, %v574_v30  ;;  %v154_v33 = vmul.f32 %v146_v32, %v574_v30  ;;  %v156_v34 = vmul.f32 2.0, %v152_v29 }
  0x4e   :  { %v151_v35 = vadd.f32 %v147_v20, %v576_v31  ;;  %v155_v2 = vmul.f32 %v147_v20, %v576_v31  ;;  %v157_v36 = vmul.f32 2.0, %v153_v0  ;;  %v124_v25 = vadd.f32 %v96_v12, %v84_v42 }
  0x4f   :  { %v158_v38 = vmul.f32 2.0, %v154_v33  ;;  %v160_v3 = vsub.f32 %v148_v28, %v156_v34  ;;  %v175_v30 = vmul.f32 -0.5, %v576_v31  ;;  %v126_v44 = vadd.f32 %v114_v24, %v589_v46 }
  0x50   :  { %v159_v40 = vmul.f32 2.0, %v155_v2  ;;  %v161_v41 = vsub.f32 %v149_v19, %v157_v36  ;;  %v178_v42 = vadd.f32 0.75, %v174_v5  ;;  %v267_v5 = vunpack.c.0.s8 %v654_v58 }
  0x51   :  { %v162_v48 = vsub.f32 %v150_v1, %v158_v38  ;;  %v164_v49 = vmul.f32 %v160_v3, %v160_v3  ;;  %v179_v61 = vadd.f32 0.75, %v175_v30 }
  0x52   :  { %v163_v52 = vsub.f32 %v151_v35, %v159_v40  ;;  %v165_v53 = vmul.f32 %v161_v41, %v161_v41  ;;  %v270_v58 = vsub.s32 %v267_v5, %v657_v60  ;;  %v320_v5 = vsub.s32 0, %v657_v60 }
  0x53   :  { %v166_v55 = vmul.f32 %v162_v48, %v162_v48  ;;  %v168_v56 = vmul.f32 %v164_v49, %v124_v25 }
  0x54   :  { %v167_v43 = vmul.f32 %v163_v52, %v163_v52  ;;  %v169_v59 = vmul.f32 %v165_v53, %v125_v39 }
  0x55   :  { %v170_v31 = vmul.f32 %v166_v55, %v126_v44  ;;  %v180_v46 = vmul.f32 %v176_v50, %v168_v56 }
  0x56   :  { %v171_v62 = vmul.f32 %v167_v43, %v127_v51  ;;  %v181_v63 = vmul.f32 %v177_v54, %v169_v59 }
  0x57   :  { %v182_v47 = vmul.f32 %v178_v42, %v170_v31  ;;  %v188_v6 = vcombine.high %v180_v46, %v180_v46  ;;  %v197_v4 = vsel %vm196_vm8, %v180_v46, 0.0 }
  0x58   :  { %v183_v7 = vmul.f32 %v179_v61, %v171_v62  ;;  %v189_v8 = vcombine.high %v181_v63, %v181_v63  ;;  %v198_v9 = vrot.slane %v197_v4, 4  ;;  %v211_v10 = vsel %vm196_vm8, %v181_v63, 0.0 }
  0x59   :  { %v190_v11 = vcombine.high %v182_v47, %v182_v47  ;;  %v204_v12 = vsel %vm196_vm8, %v188_v6, 0.0  ;;  %v212_v13 = vrot.slane %v211_v10, 4  ;;  %v225_v14 = vsel %vm196_vm8, %v182_v47, 0.0 }
  0x5a   :  { %v191_v15 = vcombine.high %v183_v7, %v183_v7  ;;  %v199_v45 = vadd.f32 %v198_v9, %v197_v4  ;;  %v205_v18 = vrot.slane %v204_v12, 4  ;;  %v218_v21 = vsel %vm196_vm8, %v189_v8, 0.0 }
  0x5b   :  { %v213_v22 = vadd.f32 %v212_v13, %v211_v10  ;;  %v219_v23 = vrot.slane %v218_v21, 4  ;;  %v226_v16 = vrot.slane %v225_v14, 4  ;;  %v232_v26 = vsel %vm196_vm8, %v190_v11, 0.0 }
  0x5c   :  { %v200_v27 = vrot.slane %v199_v45, 2  ;;  %v206_v28 = vadd.f32 %v205_v18, %v204_v12  ;;  %v233_v29 = vrot.slane %v232_v26, 4  ;;  %v239_v17 = vsel %vm196_vm8, %v183_v7, 0.0 }
  0x5d   :  { %v214_v32 = vrot.slane %v213_v22, 2  ;;  %v220_v19 = vadd.f32 %v219_v23, %v218_v21  ;;  %v227_v0 = vadd.f32 %v226_v16, %v225_v14  ;;  %v240_v20 = vrot.slane %v239_v17, 4 }
  0x5e   :  { %v201_v1 = vadd.f32 %v200_v27, %v199_v45  ;;  %v207_v33 = vrot.slane %v206_v28, 2  ;;  %v234_v34 = vadd.f32 %v233_v29, %v232_v26  ;;  %v246_v24 = vsel %vm196_vm8, %v191_v15, 0.0 }
  0x5f   :  { %v215_v35 = vadd.f32 %v214_v32, %v213_v22  ;;  %v221_v2 = vrot.slane %v220_v19, 2  ;;  %v228_v36 = vrot.slane %v227_v0, 2  ;;  %v241_v37 = vadd.f32 %v240_v20, %v239_v17 }
  0x60   :  { %v202_v25 = vrot.slane %v201_v1, 1  ;;  %v208_v38 = vadd.f32 %v207_v33, %v206_v28  ;;  %v235_v3 = vrot.slane %v234_v34, 2  ;;  %v247_v39 = vrot.slane %v246_v24, 4 }
  0x61   :  { %v216_v40 = vrot.slane %v215_v35, 1  ;;  %v222_v41 = vadd.f32 %v221_v2, %v220_v19  ;;  %v229_v30 = vadd.f32 %v228_v36, %v227_v0  ;;  %v242_v44 = vrot.slane %v241_v37, 2 }
  0x62   :  { %v203_v48 = vadd.f32 %v202_v25, %v201_v1  ;;  %v209_v49 = vrot.slane %v208_v38, 1  ;;  %v236_v50 = vadd.f32 %v235_v3, %v234_v34  ;;  %v248_v51 = vadd.f32 %v247_v39, %v246_v24 }
  0x63   :  { %v217_v52 = vadd.f32 %v216_v40, %v215_v35  ;;  %v223_v53 = vrot.slane %v222_v41, 1  ;;  %v230_v54 = vrot.slane %v229_v30, 1  ;;  %v243_v55 = vadd.f32 %v242_v44, %v241_v37 }
  0x64   :  { %v210_v56 = vadd.f32 %v209_v49, %v208_v38  ;;  %v237_v42 = vrot.slane %v236_v50, 1  ;;  %v249_v57 = vrot.slane %v248_v51, 2  ;;  %v324_v18 = vsub.s32 1, %v657_v60 }
  0x65   :  { %v224_v43 = vadd.f32 %v223_v53, %v222_v41  ;;  %v231_v59 = vadd.f32 %v230_v54, %v229_v30  ;;  %v244_v61 = vrot.slane %v243_v55, 1  ;;  %v328_v21 = vsub.s32 2, %v657_v60 }
  0x66   :  { %v238_v31 = vadd.f32 %v237_v42, %v236_v50  ;;  %v250_v46 = vadd.f32 %v249_v57, %v248_v51  ;;  %v261_v62 = vcombine.low %v203_v48, %v210_v56  ;;  %v332_v22 = vsub.s32 3, %v657_v60 }
  0x67   :  { %v262_v63 = vcombine.low %v217_v52, %v224_v43  ;;  %v245_v47 = vadd.f32 %v244_v61, %v243_v55  ;;  %v336_v16 = vsub.s32 4, %v657_v60  ;;  %v340_v26 = vsub.s32 5, %v657_v60 }
  0x68   :  { %v251_v6 = vrot.slane %v250_v46, 1  ;;  %v263_v4 = vcombine.low %v231_v59, %v238_v31  ;;  %v271_v7 = vrot.slane %v261_v62, %v270_v58  ;;  %v344_v32 = vsub.s32 6, %v657_v60 }
  0x69   :  { %v278_v8 = vrot.slane %v262_v63, %v270_v58  ;;  %v348_v24 = vsub.s32 7, %v657_v60 }
  0x6a   :  { %v252_v9 = vadd.f32 %v251_v6, %v250_v46  ;;  %v285_v11 = vrot.slane %v263_v4, %v270_v58 }
  0x6b   :  { %v293_v12 = vcombine.low %v271_v7, %v278_v8 }
  0x6c   :  { %v264_v10 = vcombine.low %v245_v47, %v252_v9 }
  0x6d   :  { %v301_v15 = vrot.slane %v293_v12, %v270_v58 }
  0x6e   :  { %v292_v13 = vrot.slane %v264_v10, %v270_v58 }
  0x70   :  { %v294_v14 = vcombine.low %v285_v11, %v292_v13 }
  0x72   :  { %v308_v45 = vrot.slane %v294_v14, %v270_v58 }
  0x74   :  { %v309_v23 = vcombine.low %v301_v15, %v308_v45 }
  0x76   :  { %v321_v27 = vrot.slane %v309_v23, %v320_v5  ;;  %v325_v28 = vrot.slane %v309_v23, %v324_v18  ;;  %v329_v29 = vrot.slane %v309_v23, %v328_v21  ;;  %v333_v17 = vrot.slane %v309_v23, %v332_v22 }
  0x77   :  { %v337_v19 = vrot.slane %v309_v23, %v336_v16  ;;  %v341_v34 = vrot.slane %v309_v23, %v340_v26  ;;  %v345_v36 = vrot.slane %v309_v23, %v344_v32  ;;  %v349_v38 = vrot.slane %v309_v23, %v348_v24 }
  0x78   :  { %v359_v0 = vsel %vm358_vm9, %v321_v27, 0.0  ;;  %v360_v20 = vsel %vm358_vm9, %v325_v28, 0.0  ;;  %v362_v1 = vsel %vm358_vm9, %v329_v29, 0.0  ;;  %v364_v35 = vsel %vm358_vm9, %v333_v17, 0.0 }
  0x79   :  { %v361_v33 = vadd.f32 %v360_v20, %v359_v0  ;;  %v366_v37 = vsel %vm358_vm9, %v337_v19, 0.0  ;;  %v368_v3 = vsel %vm358_vm9, %v341_v34, 0.0  ;;  %v370_v40 = vsel %vm358_vm9, %v345_v36, 0.0 }
  0x7a   :  { %v372_v30 = vsel %vm358_vm9, %v349_v38, 0.0 }
  0x7b   :  { %v363_v2 = vadd.f32 %v362_v1, %v361_v33 }
  0x7d   :  { %v365_v25 = vadd.f32 %v364_v35, %v363_v2 }
  0x7f   :  { %v367_v39 = vadd.f32 %v366_v37, %v365_v25 }
  0x81   :  { %v369_v41 = vadd.f32 %v368_v3, %v367_v39 }
  0x83   :  { %v371_v44 = vadd.f32 %v370_v40, %v369_v41 }
  0x85   :  { %v373_v48 = vadd.f32 %v372_v30, %v371_v44 }
  0x87   :  { %374 = vadd.xlane.f32.xlu0 %v373_v48 }
 0x114   :  { %v375_v60 = vpop.xlane.xlu0 %374 }
 0x115   :  { %v379_v49 = vrot.slane %v375_v60, %v320_v5 }
 0x117   :  { %380 = vst [vmem:[#allocation8] sm:$0xff] %v379_v49 }
 0x118   :  { %480 = shalt.err (!%p477_p6)
}
 0x119   :  { %s481_s8 = scalar_lea.hbm %s699_s2, 128 }
 0x11a   :  { %p482_p7 = scmp.ne.s32.totalorder %s699_s2, %s481_s8  ;;  %p485_p8 = scmp.lt.u32.totalorder %s481_s8, %s699_s2 }
 0x11c   :  { %p487_p9 = pnand %p485_p8, %p482_p7 }
 0x11e   :  { %490 = shalt.err (!%p487_p9)
}
 0x11f   :  { %390 = dma.vmem_to_hbm [thread:$0]  %s388_s4, 128, %s699_s2, [#allocation5]  }
 0x120   :  { %495 = dma.done.wait [#allocation5], 128  }
 0x121   :  { %496 = vsyncadd [#allocation5], 4294967168 }
 0x122   :  { %394 = vsyncpa [#allocation4], 1 }
 0x123   :  { %395 = vsyncpa [#allocation7], 1 }
 0x124   :  { %396 = vsyncpa [#allocation5], 1 }

</bundles_post_ra>
